<compile_context>
chip_gen: v5e
topology: v5e:2x2
jax: 0.10.0
libtpu: 0.0.40
codegen_flags: <defaults>
</compile_context>

<pallas_src>
import jax
import jax.numpy as jnp
import numpy as np
from jax import lax
from jax.experimental import pallas as pl
from jax.experimental.pallas import tpu as pltpu


_VMEM_LIMIT = 48 * 1024 * 1024  # safe on v7x (64 MiB physical), headroom on v5e/v6e


def _silu(x):
    return x * jax.nn.sigmoid(x)


def _round_up(x, m):
    return ((x + m - 1) // m) * m


def _pad_rows(x, n):
    pad = n - x.shape[0]
    if pad <= 0:
        return x
    return jnp.pad(x, ((0, pad),) + ((0, 0),) * (x.ndim - 1))


# ---------------------------------------------------------------------------
# Kernel 1: split_net (MLP [2F,2F,2F], silu between layers) + outer silu
# ---------------------------------------------------------------------------
def edge_mlp_kernel(f_ref, w1_ref, b1_ref, w2_ref, b2_ref, o_ref):
    h = jnp.dot(f_ref[...], w1_ref[...], preferred_element_type=jnp.float32) + b1_ref[...]
    h = _silu(h)                                   # MLP inner activation
    h = jnp.dot(h, w2_ref[...], preferred_element_type=jnp.float32) + b2_ref[...]
    o_ref[...] = _silu(h).astype(o_ref.dtype)      # outer self.act(...)


def edge_mlp(f, w1, b1, w2, b2, *, te):
    E, C = f.shape
    return pl.pallas_call(
        edge_mlp_kernel,
        out_shape=jax.ShapeDtypeStruct((E, C), jnp.float32),
        grid_spec=pltpu.PrefetchScalarGridSpec(
            num_scalar_prefetch=0,
            grid=(E // te,),
            in_specs=[
                pl.BlockSpec((te, C), lambda i: (i, 0)),
                pl.BlockSpec((C, C), lambda i: (0, 0)),
                pl.BlockSpec((1, C), lambda i: (0, 0)),
                pl.BlockSpec((C, C), lambda i: (0, 0)),
                pl.BlockSpec((1, C), lambda i: (0, 0)),
            ],
            out_specs=pl.BlockSpec((te, C), lambda i: (i, 0)),
        ),
        compiler_params=pltpu.CompilerParams(
            dimension_semantics=("parallel",),
            vmem_limit_bytes=_VMEM_LIMIT),
    )(f, w1, b1, w2, b2)


# ---------------------------------------------------------------------------
# Kernel 2 (fused stages 2+3): per-triplet interaction + sparse one-hot
# scatter into a per-edge-tile accumulator; lin_out at the last k step.
#
# Grid: (edge tiles "parallel", k "arbitrary"), where k indexes triplet tiles
# inside the scalar-prefetched range [klo[i], klo[i]+kcnt[i]) for edge tile i.
# Triplets whose edge falls outside the current edge tile are masked by the
# one-hot compare, so boundary tiles stay correct.
# ---------------------------------------------------------------------------
def triplet_scatter_kernel(klo_ref, kcnt_ref,
                           gk_ref, gj_ref, m01_ref, m02_ref, idx_ref,
                           w01_ref, b01_ref, w02_ref, b02_ref,
                           wsa_ref, wsb_ref, bs_ref, wout_ref, bout_ref,
                           o_ref, acc_ref):
    i = pl.program_id(0)
    k = pl.program_id(1)
    F = m01_ref.shape[1]
    te = o_ref.shape[0]

    @pl.when(k == 0)
    def _init():
        acc_ref[...] = jnp.zeros_like(acc_ref)

    @pl.when(k < kcnt_ref[i])
    def _body():
        gk = gk_ref[...]                      # (tT, 2F)  gathered f_act[idx_ki]
        gj = gj_ref[...]                      # (tT, 2F)  gathered f_act[idx_ji]
        p01 = gk[:, :F] * m01_ref[...] * gj[:, :F]
        p02 = gk[:, F:] * m02_ref[...] * gj[:, F:]
        h01 = _silu(jnp.dot(p01, w01_ref[...], preferred_element_type=jnp.float32)
                    + b01_ref[...])
        h02 = _silu(jnp.dot(p02, w02_ref[...], preferred_element_type=jnp.float32)
                    + b02_ref[...])
        s = _silu(jnp.dot(h01, wsa_ref[...], preferred_element_type=jnp.float32)
                  + jnp.dot(h02, wsb_ref[...], preferred_element_type=jnp.float32)
                  + bs_ref[...])               # (tT, F)
        # one-hot scatter-add of this triplet tile into the edge-tile accumulator.
        e_col = i * te + lax.broadcasted_iota(jnp.int32, (te, 1), 0)   # (te, 1)
        onehot = (e_col == idx_ref[...]).astype(jnp.float32)           # (te, tT)
        acc_ref[...] += jnp.dot(onehot, s, preferred_element_type=jnp.float32)

    @pl.when(k == pl.num_programs(1) - 1)
    def _fin():
        out = jnp.dot(acc_ref[...], wout_ref[...],
                      preferred_element_type=jnp.float32) + bout_ref[...]
        o_ref[...] = out.astype(o_ref.dtype)


def triplet_scatter(klo, kcnt, g_k, g_j, M01, M02, idx2d,
                    w01, b01, w02, b02, wsa, wsb, bs, wout, bout,
                    *, num_edges_pad, te, tT, k_span):
    T_pad, twoF = g_k.shape
    F = twoF // 2

    def t_map(i, k, klo_ref, kcnt_ref):
        kk = jnp.minimum(k, jnp.maximum(kcnt_ref[i] - 1, 0))
        return (klo_ref[i] + kk, 0)

    def idx_map(i, k, klo_ref, kcnt_ref):
        kk = jnp.minimum(k, jnp.maximum(kcnt_ref[i] - 1, 0))
        return (0, klo_ref[i] + kk)

    def w_map(i, k, *_):
        return (0, 0)

    def o_map(i, k, *_):
        return (i, 0)

    return pl.pallas_call(
        triplet_scatter_kernel,
        out_shape=jax.ShapeDtypeStruct((num_edges_pad, F), jnp.float32),
        grid_spec=pltpu.PrefetchScalarGridSpec(
            num_scalar_prefetch=2,
            grid=(num_edges_pad // te, k_span),
            in_specs=[
                pl.BlockSpec((tT, twoF), t_map),   # g_k
                pl.BlockSpec((tT, twoF), t_map),   # g_j
                pl.BlockSpec((tT, F), t_map),      # M01 (sorted)
                pl.BlockSpec((tT, F), t_map),      # M02 (sorted)
                pl.BlockSpec((1, tT), idx_map),    # idx_ji (sorted, -1 padded)
                pl.BlockSpec((F, F), w_map),       # w_s01
                pl.BlockSpec((1, F), w_map),       # b_s01
                pl.BlockSpec((F, F), w_map),       # w_s02
                pl.BlockSpec((1, F), w_map),       # b_s02
                pl.BlockSpec((F, F), w_map),       # w_s[:F]
                pl.BlockSpec((F, F), w_map),       # w_s[F:]
                pl.BlockSpec((1, F), w_map),       # b_s
                pl.BlockSpec((F, F), w_map),       # w_out
                pl.BlockSpec((1, F), w_map),       # b_out
            ],
            out_specs=pl.BlockSpec((te, F), o_map),
            scratch_shapes=[pltpu.VMEM((te, F), jnp.float32)],
        ),
        compiler_params=pltpu.CompilerParams(
            dimension_semantics=("parallel", "arbitrary"),
            vmem_limit_bytes=_VMEM_LIMIT),
    )(klo, kcnt, g_k, g_j, M01, M02, idx2d,
      w01, b01, w02, b02, wsa, wsb, bs, wout, bout)


# ---------------------------------------------------------------------------
# Full forward pass of MomentInteraction
# ---------------------------------------------------------------------------
def moment_interaction(params, f, M01, M02, num_edges, idx_ji, idx_ki,
                       *, te_edge=1024, te_out=256, tt=512):
    E, twoF = f.shape
    F = twoF // 2
    T = int(M01.shape[0])

    # ---- stage 1: split_net MLP + outer silu (Pallas kernel 1) -------------
    te1 = _round_up(min(te_edge, _round_up(E, 8)), 8)
    E1_pad = _round_up(E, te1)
    f_pad = _pad_rows(f.astype(jnp.float32), E1_pad)
    f_act = edge_mlp(f_pad, params["w1"], params["b1"], params["w2"], params["b2"],
                     te=te1)

    # ---- preprocessing: sort triplets by destination edge ------------------
    # (segment-sum is permutation invariant; sorting enables the sparse,
    #  range-based scatter below).
    idx_ji_np = np.asarray(idx_ji, dtype=np.int32)
    idx_ki_np = np.asarray(idx_ki, dtype=np.int32)
    order = np.argsort(idx_ji_np, kind="stable").astype(np.int32)
    idx_ji_s = idx_ji_np[order]
    idx_ki_s = idx_ki_np[order]

    # ---- tiling for the fused triplet+scatter kernel ------------------------
    tt_e = _round_up(max(128, min(tt, _round_up(T, 128))), 128)
    T_pad = _round_up(T, tt_e)
    te_o = _round_up(min(te_out, _round_up(E, 8)), 8)
    E_pad = _round_up(E, te_o)
    n_e_tiles = E_pad // te_o

    # Per-edge-tile triplet-tile ranges (host-side preprocessing metadata).
    bounds = np.arange(n_e_tiles + 1, dtype=np.int64) * te_o
    starts = np.searchsorted(idx_ji_s, bounds[:-1], side="left")
    ends = np.searchsorted(idx_ji_s, bounds[1:], side="left")
    has = ends > starts
    klo = np.where(has, starts // tt_e, 0).astype(np.int32)
    khi = np.where(has, (np.maximum(ends, 1) - 1) // tt_e, 0).astype(np.int32)
    kcnt = np.where(has, khi - klo + 1, 0).astype(np.int32)
    k_span = max(int(kcnt.max()) if kcnt.size else 1, 1)

    # ---- gathers by triplet indices (XLA gather-DMAs) -----------------------
    # TODO(synk): move these row gathers into the Pallas kernel (VMEM-resident
    # f_act) to drop the (T, 2F) HBM round trips; kept in XLA for guaranteed
    # Mosaic lowering.
    idx_ki_pad = jnp.asarray(np.pad(idx_ki_s, (0, T_pad - T)))
    idx_ji_pad = jnp.asarray(np.pad(idx_ji_s, (0, T_pad - T)))
    g_k = f_act[idx_ki_pad]                              # (T_pad, 2F)
    g_j = f_act[idx_ji_pad]                              # (T_pad, 2F)

    order_dev = jnp.asarray(order)
    M01_s = _pad_rows(jnp.take(M01.astype(jnp.float32), order_dev, axis=0), T_pad)
    M02_s = _pad_rows(jnp.take(M02.astype(jnp.float32), order_dev, axis=0), T_pad)

    # padded triplets carry idx = -1 -> never match an edge id -> masked.
    idx_scatter = jnp.asarray(
        np.pad(idx_ji_s, (0, T_pad - T), constant_values=-1))[None, :]

    w_s = params["w_s"]
    out_pad = triplet_scatter(
        jnp.asarray(klo), jnp.asarray(kcnt),
        g_k, g_j, M01_s, M02_s, idx_scatter,
        params["w_s01"], params["b_s01"], params["w_s02"], params["b_s02"],
        w_s[:F], w_s[F:], params["b_s"], params["w_out"], params["b_out"],
        num_edges_pad=E_pad, te=te_o, tT=tt_e, k_span=k_span)
    return out_pad[:num_edges]


# Pure-JAX reference (mirrors the PyTorch semantics) for a correctness check.
def reference(params, f, M01, M02, num_edges, idx_ji, idx_ki):
    F = M01.shape[-1]
    h = _silu(f @ params["w1"] + params["b1"])
    h = _silu(h @ params["w2"] + params["b2"])     # split_net + outer act
    f01, f02 = h[:, :F], h[:, F:]
    s01 = f01[idx_ki] * M01 * f01[idx_ji]
    s01 = _silu(s01 @ params["w_s01"] + params["b_s01"])
    s02 = f02[idx_ki] * M02 * f02[idx_ji]
    s02 = _silu(s02 @ params["w_s02"] + params["b_s02"])
    s = _silu(jnp.concatenate([s01, s02], -1) @ params["w_s"] + params["b_s"])
    out = jax.ops.segment_sum(s, idx_ji, num_segments=num_edges)
    return out @ params["w_out"] + params["b_out"]


def init_params(key, F):
    ks = jax.random.split(key, 12)
    scale = 0.1
    return {
        "w1":    scale * jax.random.normal(ks[0], (2 * F, 2 * F), jnp.float32),
        "b1":    scale * jax.random.normal(ks[1], (1, 2 * F), jnp.float32),
        "w2":    scale * jax.random.normal(ks[2], (2 * F, 2 * F), jnp.float32),
        "b2":    scale * jax.random.normal(ks[3], (1, 2 * F), jnp.float32),
        "w_s01": scale * jax.random.normal(ks[4], (F, F), jnp.float32),
        "b_s01": scale * jax.random.normal(ks[5], (1, F), jnp.float32),
        "w_s02": scale * jax.random.normal(ks[6], (F, F), jnp.float32),
        "b_s02": scale * jax.random.normal(ks[7], (1, F), jnp.float32),
        "w_s":   scale * jax.random.normal(ks[8], (2 * F, F), jnp.float32),
        "b_s":   scale * jax.random.normal(ks[9], (1, F), jnp.float32),
        "w_out": scale * jax.random.normal(ks[10], (F, F), jnp.float32),
        "b_out": scale * jax.random.normal(ks[11], (1, F), jnp.float32),
    }


if __name__ == "__main__":
    F = 32            # feature dim
    E = 64            # num_edges
    T = 512           # number of triplets

    key = jax.random.PRNGKey(0)
    k_f, k_m1, k_m2, k_ji, k_ki, k_p = jax.random.split(key, 6)

    f = jax.random.normal(k_f, (E, 2 * F), jnp.float32)
    M01 = jax.random.normal(k_m1, (T, F), jnp.float32)
    M02 = jax.random.normal(k_m2, (T, F), jnp.float32)
    idx_ji = jax.random.randint(k_ji, (T,), 0, E, jnp.int32)
    idx_ki = jax.random.randint(k_ki, (T,), 0, E, jnp.int32)
    params = init_params(k_p, F)

    # Small tiles so the demo exercises several edge tiles (parallel axis) and
    # several triplet tiles per edge tile (sparse range machinery).
    out = moment_interaction(params, f, M01, M02, E, idx_ji, idx_ki,
                             te_edge=64, te_out=16, tt=128)
    out = jax.block_until_ready(out)

    ref = jax.block_until_ready(reference(params, f, M01, M02, E, idx_ji, idx_ki))
    np.testing.assert_allclose(np.asarray(out), np.asarray(ref), rtol=1e-4, atol=1e-4)

    print("KERNEL_OK")
</pallas_src>

<mosaic_0001>
module attributes {stable_mosaic.version = 11 : i64} {
  func.func @edge_mlp_kernel(%arg0: i32, %arg1: memref<64x64xf32, #tpu.memory_space<vmem>>, %arg2: memref<64x64xf32, #tpu.memory_space<vmem>>, %arg3: memref<1x64xf32, #tpu.memory_space<vmem>>, %arg4: memref<64x64xf32, #tpu.memory_space<vmem>>, %arg5: memref<1x64xf32, #tpu.memory_space<vmem>>, %arg6: memref<64x64xf32, #tpu.memory_space<vmem>>) attributes {dimension_semantics = [#tpu.dimension_semantics<parallel>], iteration_bounds = array<i64: 1>, scalar_prefetch = 0 : i64, scratch_operands = 0 : i64, tpu.core_type = #tpu.core_type<tc>, window_params = [{transform_indices = @transform_0, window_bounds = array<i64: 64, 64>}, {pipeline_mode = #tpu.pipeline_mode<synchronous>, transform_indices = @transform_1, window_bounds = array<i64: 64, 64>}, {pipeline_mode = #tpu.pipeline_mode<synchronous>, transform_indices = @transform_2, window_bounds = array<i64: 1, 64>}, {pipeline_mode = #tpu.pipeline_mode<synchronous>, transform_indices = @transform_3, window_bounds = array<i64: 64, 64>}, {pipeline_mode = #tpu.pipeline_mode<synchronous>, transform_indices = @transform_4, window_bounds = array<i64: 1, 64>}, {transform_indices = @transform_5, window_bounds = array<i64: 64, 64>}]} {
    %c0 = arith.constant 0 : index
    %c0_0 = arith.constant 0 : index
    %0 = vector.load %arg1[%c0, %c0_0] : memref<64x64xf32, #tpu.memory_space<vmem>>, vector<64x64xf32>
    %c0_1 = arith.constant 0 : index
    %c0_2 = arith.constant 0 : index
    %1 = vector.load %arg2[%c0_1, %c0_2] : memref<64x64xf32, #tpu.memory_space<vmem>>, vector<64x64xf32>
    %cst = arith.constant dense<0.000000e+00> : vector<64x64xf32>
    %2 = tpu.matmul %0, %1, %cst {dimension_numbers = #tpu.dot_dimension_numbers<[1], [0], [0], [1], [0, 0, 1, 1], [], []>} : vector<64x64xf32>, vector<64x64xf32>, vector<64x64xf32> -> vector<64x64xf32>
    %c0_3 = arith.constant 0 : index
    %c0_4 = arith.constant 0 : index
    %3 = vector.load %arg3[%c0_3, %c0_4] : memref<1x64xf32, #tpu.memory_space<vmem>>, vector<1x64xf32>
    %4 = vector.broadcast %3 : vector<1x64xf32> to vector<64x64xf32>
    %5 = arith.addf %2, %4 : vector<64x64xf32>
    %6 = arith.negf %5 : vector<64x64xf32>
    %7 = math.exp %6 : vector<64x64xf32>
    %cst_5 = arith.constant 1.000000e+00 : f32
    %8 = vector.broadcast %cst_5 : f32 to vector<64x64xf32>
    %9 = arith.addf %8, %7 : vector<64x64xf32>
    %10 = arith.divf %8, %9 : vector<64x64xf32>
    %11 = arith.mulf %5, %10 : vector<64x64xf32>
    %c0_6 = arith.constant 0 : index
    %c0_7 = arith.constant 0 : index
    %12 = vector.load %arg4[%c0_6, %c0_7] : memref<64x64xf32, #tpu.memory_space<vmem>>, vector<64x64xf32>
    %cst_8 = arith.constant dense<0.000000e+00> : vector<64x64xf32>
    %13 = tpu.matmul %11, %12, %cst_8 {dimension_numbers = #tpu.dot_dimension_numbers<[1], [0], [0], [1], [0, 0, 1, 1], [], []>} : vector<64x64xf32>, vector<64x64xf32>, vector<64x64xf32> -> vector<64x64xf32>
    %c0_9 = arith.constant 0 : index
    %c0_10 = arith.constant 0 : index
    %14 = vector.load %arg5[%c0_9, %c0_10] : memref<1x64xf32, #tpu.memory_space<vmem>>, vector<1x64xf32>
    %15 = vector.broadcast %14 : vector<1x64xf32> to vector<64x64xf32>
    %16 = arith.addf %13, %15 : vector<64x64xf32>
    %17 = arith.negf %16 : vector<64x64xf32>
    %18 = math.exp %17 : vector<64x64xf32>
    %cst_11 = arith.constant 1.000000e+00 : f32
    %19 = vector.broadcast %cst_11 : f32 to vector<64x64xf32>
    %20 = arith.addf %19, %18 : vector<64x64xf32>
    %21 = arith.divf %19, %20 : vector<64x64xf32>
    %22 = arith.mulf %16, %21 : vector<64x64xf32>
    %c0_12 = arith.constant 0 : index
    %c0_13 = arith.constant 0 : index
    %23 = vector.load %arg6[%c0_12, %c0_13] : memref<64x64xf32, #tpu.memory_space<vmem>>, vector<64x64xf32>
    tpu.vector_store %arg6[%c0_12, %c0_13], %22 {strides = array<i32>} : memref<64x64xf32, #tpu.memory_space<vmem>>, vector<64x64xf32>,
    return
  }
  func.func @transform_0(%arg0: i32) -> (i32, i32) {
    %c0_i32 = arith.constant 0 : i32
    %c0_i32_0 = arith.constant 0 : i32
    return %arg0, %c0_i32 : i32, i32
  }
  func.func @transform_1(%arg0: i32) -> (i32, i32) {
    %c0_i32 = arith.constant 0 : i32
    %c0_i32_0 = arith.constant 0 : i32
    %c0_i32_1 = arith.constant 0 : i32
    return %c0_i32, %c0_i32_0 : i32, i32
  }
  func.func @transform_2(%arg0: i32) -> (i32, i32) {
    %c0_i32 = arith.constant 0 : i32
    %c0_i32_0 = arith.constant 0 : i32
    %c0_i32_1 = arith.constant 0 : i32
    return %c0_i32, %c0_i32_0 : i32, i32
  }
  func.func @transform_3(%arg0: i32) -> (i32, i32) {
    %c0_i32 = arith.constant 0 : i32
    %c0_i32_0 = arith.constant 0 : i32
    %c0_i32_1 = arith.constant 0 : i32
    return %c0_i32, %c0_i32_0 : i32, i32
  }
  func.func @transform_4(%arg0: i32) -> (i32, i32) {
    %c0_i32 = arith.constant 0 : i32
    %c0_i32_0 = arith.constant 0 : i32
    %c0_i32_1 = arith.constant 0 : i32
    return %c0_i32, %c0_i32_0 : i32, i32
  }
  func.func @transform_5(%arg0: i32) -> (i32, i32) {
    %c0_i32 = arith.constant 0 : i32
    %c0_i32_0 = arith.constant 0 : i32
    return %arg0, %c0_i32 : i32, i32
  }
}

</mosaic_0001>

<bundles_post_ra>
// kernel: tpu_custom_call.1
= control target key start
LH: loop header
LB: loop body
LE: loop exit
PB: predicated region body
PF: predicated region fallthrough
CT: control target
= control target key end

     0   :  { %10 = vsyncpa [#allocation3], 0  ;;  %s1040_s0 = inlined_call_operand.hbm [shape: f32[64,64], index: 0, kind: input, shape index: {}]   ;;  %s1041_s1 = inlined_call_operand.hbm [shape: f32[64,64], index: 1, kind: input, shape index: {}]   ;;  %s1042_s2 = inlined_call_operand.vmem [shape: f32[1,64], index: 2, kind: input, shape index: {}]   ;;  %s1043_s3 = inlined_call_operand.hbm [shape: f32[64,64], index: 3, kind: input, shape index: {}]   ;;  %s1044_s4 = inlined_call_operand.vmem [shape: f32[1,64], index: 4, kind: input, shape index: {}]   ;;  %s1045_s5 = inlined_call_operand.hbm [shape: f32[64,64], index: 5, kind: output, shape index: {}]  }
   0x1   :  { %11 = vsyncpa [#allocation6], 0 }
   0x2   :  { %12 = vsyncpa [#allocation4], 0  ;;  %s30_s20 = sshll.u32 %s1041_s1, 4  ;;  %s801_s21 = smov [#allocation5]   ;;  %s31_s20 = int_to_ptr.hbm [resolvable:$true] %s30_s20 }
   0x3   :  { %s32_s22 = sshll.u32 %s801_s21, 4  ;;  %s17_s25 = sshll.u32 %s1040_s0, 4  ;;  %s33_s22 = int_to_ptr.vmem [resolvable:$true] %s32_s22  ;;  %s18_s25 = int_to_ptr.hbm [resolvable:$true] %s17_s25 }
   0x4   :  { %s802_s26 = smov 128   ;;  %s803_s27 = smov 8  }
   0x5   :  { %38 = dma.hbm_to_vmem [thread:$0]  %s31_s20, 1024, %s33_s22, [#allocation6], %s802_s26, %s802_s26, %s803_s27  }
   0x6   :  { %s804_s28 = smov [#allocation2]   ;;  %s45_s1 = sshll.u32 %s1043_s3, 4  ;;  %s46_s1 = int_to_ptr.hbm [resolvable:$true] %s45_s1 }
   0x7   :  { %s19_s29 = sshll.u32 %s804_s28, 4  ;;  %s805_s0 = smov [#allocation7]   ;;  %s20_s29 = int_to_ptr.vmem [resolvable:$true] %s19_s29 }
   0x8   :  { %25 = dma.hbm_to_vmem [thread:$0]  %s18_s25, 1024, %s20_s29, [#allocation3], %s802_s26, %s802_s26, %s803_s27  }
   0x9   :  { %s47_s7 = sshll.u32 %s805_s0, 4  ;;  %s48_s7 = int_to_ptr.vmem [resolvable:$true] %s47_s7 }
   0xa   :  { %53 = dma.hbm_to_vmem [thread:$0]  %s46_s1, 1024, %s48_s7, [#allocation6], %s802_s26, %s802_s26, %s803_s27  }
   0xb   :  { %795 = dma.done.wait [#allocation3], 1024  }
   0xc   :  { %796 = vsyncadd [#allocation3], 4294966272 }
   0xd   :  { %797 = dma.done.wait [#allocation6], 2048  }
   0xe   :  { %798 = vsyncadd [#allocation6], 4294965248  ;;  %v83_v0 = vld [vmem:[#allocation5 + $0x38] sm:$0xff]  ;;  %v82_v1 = vld [vmem:[#allocation5 + $0x30] sm:$0xff]  ;;  %vm88_vm0 = vcmask 523264   ;;  %s565_s13 = sshll.u32 %s1045_s5, 4  ;;  %s566_s13 = int_to_ptr.hbm [resolvable:$true] %s565_s13 }
   0xf   :  { %121 = vmatpush.msra.mxu0 %v83_v0  ;;  %611 = vmatpush.msra.mxu2 %v83_v0  ;;  %v81_v2 = vld [vmem:[#allocation5 + $0x28] sm:$0xff]  ;;  %v80_v3 = vld [vmem:[#allocation5 + $0x20] sm:$0xff]  ;;  %v79_v4 = vld [vmem:[#allocation5 + $0x18] sm:$0xff] }
  0x10   :  { %v78_v5 = vld [vmem:[#allocation5 + $0x10] sm:$0xff]  ;;  %v77_v6 = vld [vmem:[#allocation5 + $0x8] sm:$0xff]  ;;  %v76_v7 = vld [vmem:[#allocation5] sm:$0xff] }
  0x11   :  { %122 = vmatpush.msra.mxu0 %v82_v1  ;;  %612 = vmatpush.msra.mxu2 %v82_v1  ;;  %v68_v8 = vld [vmem:[#allocation2] sm:$0xff]  ;;  %v69_v10 = vld [vmem:[#allocation2 + $0x8] sm:$0xff]  ;;  %v70_v12 = vld [vmem:[#allocation2 + $0x10] sm:$0xff] }
  0x12   :  { %v72_v9 = vld [vmem:[#allocation2 + $0x20] sm:$0xff]  ;;  %v73_v11 = vld [vmem:[#allocation2 + $0x28] sm:$0xff]  ;;  %v74_v13 = vld [vmem:[#allocation2 + $0x30] sm:$0xff] }
  0x13   :  { %123 = vmatpush.msra.mxu0 %v81_v2  ;;  %613 = vmatpush.msra.mxu2 %v81_v2  ;;  %v71_v14 = vld [vmem:[#allocation2 + $0x18] sm:$0xff]  ;;  %v320_v17 = vld [vmem:[#allocation7 + $0x30] sm:$0xff]  ;;  %v319_v18 = vld [vmem:[#allocation7 + $0x28] sm:$0xff] }
  0x14   :  { %v75_v15 = vld [vmem:[#allocation2 + $0x38] sm:$0xff]  ;;  %v318_v19 = vld [vmem:[#allocation7 + $0x20] sm:$0xff]  ;;  %v316_v22 = vld [vmem:[#allocation7 + $0x10] sm:$0xff] }
  0x15   :  { %124 = vmatpush.msra.mxu0 %v80_v3  ;;  %614 = vmatpush.msra.mxu2 %v80_v3  ;;  %v321_v16 = vld [vmem:[#allocation7 + $0x38] sm:$0xff]  ;;  %v866_v20 = vld [vmem:[%s1042_s2] ss:$0 sm:$0xff]  ;;  %v315_v25 = vld [vmem:[#allocation7 + $0x8] sm:$0xff] }
  0x16   :  { %358 = vmatpush.msra.mxu1 %v321_v16  ;;  %619 = vmatpush.msra.mxu3 %v321_v16  ;;  %v317_v21 = vld [vmem:[#allocation7 + $0x18] sm:$0xff]  ;;  %v314_v27 = vld [vmem:[#allocation7] sm:$0xff] }
  0x17   :  { %125 = vmatpush.msra.mxu0 %v79_v4  ;;  %615 = vmatpush.msra.mxu2 %v79_v4 }
  0x18   :  { %359 = vmatpush.msra.mxu1 %v320_v17  ;;  %620 = vmatpush.msra.mxu3 %v320_v17 }
  0x19   :  { %126 = vmatpush.msra.mxu0 %v78_v5  ;;  %616 = vmatpush.msra.mxu2 %v78_v5 }
  0x1a   :  { %360 = vmatpush.msra.mxu1 %v319_v18  ;;  %621 = vmatpush.msra.mxu3 %v319_v18 }
  0x1b   :  { %127 = vmatpush.msra.mxu0 %v77_v6  ;;  %617 = vmatpush.msra.mxu2 %v77_v6 }
  0x1c   :  { %361 = vmatpush.msra.mxu1 %v318_v19  ;;  %622 = vmatpush.msra.mxu3 %v318_v19 }
  0x1d   :  { %128 = vmatpush.msra.mxu0 %v76_v7  ;;  %618 = vmatpush.msra.mxu2 %v76_v7 }
  0x1e   :  { %579 = vmatmul.msk.f32.vlgmr.msra.gmra.mxu0 %vm88_vm0, %v68_v8  ;;  %583 = vmatmul.msk.f32.vlgmr.msra.gmra.mxu2 %vm88_vm0, %v72_v9 }
  0x1f   :  { %362 = vmatpush.msra.mxu1 %v317_v21  ;;  %623 = vmatpush.msra.mxu3 %v317_v21 }
  0x21   :  { %363 = vmatpush.msra.mxu1 %v316_v22  ;;  %624 = vmatpush.msra.mxu3 %v316_v22 }
  0x23   :  { %364 = vmatpush.msra.mxu1 %v315_v25  ;;  %625 = vmatpush.msra.mxu3 %v315_v25 }
  0x25   :  { %365 = vmatpush.msra.mxu1 %v314_v27  ;;  %626 = vmatpush.msra.mxu3 %v314_v27 }
  0x26   :  { %580 = vmatmul.msk.f32.gmra.mxu0 %vm88_vm0, %v69_v10  ;;  %584 = vmatmul.msk.f32.gmra.mxu2 %vm88_vm0, %v73_v11 }
  0x2e   :  { %581 = vmatmul.msk.f32.gmra.mxu0 %vm88_vm0, %v70_v12  ;;  %585 = vmatmul.msk.f32.gmra.mxu2 %vm88_vm0, %v74_v13 }
  0x36   :  { %582 = vmatmul.msk.f32.gmra.mxu0 %vm88_vm0, %v71_v14  ;;  %586 = vmatmul.msk.f32.gmra.mxu2 %vm88_vm0, %v75_v15 }
  0x9b   :  { %v130_v23 = vpop.f32.mrf.mxu0 }
  0x9c   :  { %v869_v24 = vadd.f32 %v866_v20, %v130_v23 }
  0x9e   :  { %v587_v26 = vmul.f32 -1.442695, %v869_v24 }
  0xa0   :  { %635 = vpow2.f32 %v587_v26 }
  0xa1   :  { %v142_v28 = vpop.f32.mrf.mxu2 }
  0xa2   :  { %v873_v29 = vadd.f32 %v866_v20, %v142_v28 }
  0xa3   :  { %v133_v30 = vpop.f32.mrf.mxu0 }
  0xa4   :  { %v591_v31 = vmul.f32 -1.442695, %v873_v29  ;;  %v877_v32 = vadd.f32 %v866_v20, %v133_v30 }
  0xa6   :  { %v636_v33 = vpop.eup %635  ;;  %637 = vpow2.f32 %v591_v31  ;;  %v588_v34 = vmul.f32 -1.442695, %v877_v32 }
  0xa7   :  { %v178_v35 = vadd.f32 1.0, %v636_v33 }
  0xa8   :  { %639 = vpow2.f32 %v588_v34 }
  0xa9   :  { %641 = vrcp.f32 %v178_v35  ;;  %v145_v36 = vpop.f32.mrf.mxu2  ;;  %vm191_vm1 = vweird.f32 %v178_v35  ;;  %v197_v48 = vand.u32 2147483648, %v178_v35  ;;  %v195_v51 = vand.u32 2147483647, %v178_v35 }
  0xaa   :  { %v881_v37 = vadd.f32 %v866_v20, %v145_v36 }
  0xab   :  { %v136_v38 = vpop.f32.mrf.mxu0  ;;  %v198_v59 = vor.u32 1.1754944e-38, %v197_v48  ;;  %vm196_vm4 = vcmp.eq.f32.partialorder %v195_v51, 8.507059e+37 }
  0xac   :  { %v638_v39 = vpop.eup %637  ;;  %v592_v40 = vmul.f32 -1.442695, %v881_v37  ;;  %v885_v41 = vadd.f32 %v866_v20, %v136_v38 }
  0xad   :  { %v182_v42 = vadd.f32 1.0, %v638_v39 }
  0xae   :  { %v640_v43 = vpop.eup %639  ;;  %643 = vpow2.f32 %v592_v40  ;;  %v589_v44 = vmul.f32 -1.442695, %v885_v41 }
  0xaf   :  { %v642_v45 = vpop.eup %641  ;;  %645 = vrcp.f32 %v182_v42  ;;  %v179_v47 = vadd.f32 1.0, %v640_v43  ;;  %v255_v1 = vand.u32 2147483647, %v182_v42  ;;  %v257_v2 = vand.u32 2147483648, %v182_v42 }
  0xb0   :  { %v187_v46 = vmul.f32 %v642_v45, %v178_v35  ;;  %647 = vpow2.f32 %v589_v44  ;;  %vm192_vm2 = vweird.f32 %v642_v45  ;;  %vm251_vm6 = vweird.f32 %v182_v42 }
  0xb1   :  { %v148_v49 = vpop.f32.mrf.mxu2  ;;  %649 = vrcp.f32 %v179_v47  ;;  %vm894_vm3 = vmor %vm191_vm1, %vm192_vm2  ;;  %v210_v10 = vand.u32 2147483647, %v179_v47  ;;  %v212_v11 = vand.u32 2147483648, %v179_v47  ;;  %vm206_vm7 = vweird.f32 %v179_v47 }
  0xb2   :  { %v188_v50 = vsub.f32 1.0, %v187_v46  ;;  %v889_v52 = vadd.f32 %v866_v20, %v148_v49  ;;  %vm909_vm9 = vcmp.eq.f32.partialorder %v255_v1, 8.507059e+37  ;;  %v258_v21 = vor.u32 1.1754944e-38, %v257_v2 }
  0xb3   :  { %v139_v53 = vpop.f32.mrf.mxu0  ;;  %vm917_vm11 = vcmp.eq.f32.partialorder %v210_v10, 8.507059e+37 }
  0xb4   :  { %v644_v54 = vpop.eup %643  ;;  %v189_v55 = vmul.f32 %v642_v45, %v188_v50  ;;  %v892_v56 = vadd.f32 %v866_v20, %v139_v53  ;;  %v593_v61 = vmul.f32 -1.442695, %v889_v52 }
  0xb5   :  { %v646_v57 = vpop.eup %645  ;;  %v898_v60 = vadd.f32 1.0, %v644_v54 }
  0xb6   :  { %v648_v62 = vpop.eup %647  ;;  %v190_v63 = vadd.f32 %v642_v45, %v189_v55  ;;  %v247_v0 = vmul.f32 %v646_v57, %v182_v42  ;;  %v590_v3 = vmul.f32 -1.442695, %v892_v56  ;;  %vm252_vm5 = vweird.f32 %v646_v57 }
  0xb7   :  { %651 = vrcp.f32 %v898_v60  ;;  %v650_v4 = vpop.eup %649  ;;  %v905_v7 = vadd.f32 1.0, %v648_v62  ;;  %vm253_vm10 = vmor %vm251_vm6, %vm252_vm5  ;;  %v270_v28 = vand.u32 2147483647, %v898_v60  ;;  %v272_v34 = vand.u32 2147483648, %v898_v60 }
  0xb8   :  { %v194_v5 = vsel %vm894_vm3, %v642_v45, %v190_v63  ;;  %v248_v6 = vsub.f32 1.0, %v247_v0  ;;  %653 = vpow2.f32 %v593_v61  ;;  %v202_v9 = vmul.f32 %v650_v4, %v179_v47 }
  0xb9   :  { %v199_v8 = vsel %vm196_vm4, %v198_v59, %v194_v5  ;;  %v151_v12 = vpop.f32.mrf.mxu2  ;;  %655 = vrcp.f32 %v905_v7  ;;  %vm207_vm8 = vweird.f32 %v650_v4  ;;  %vm221_vm13 = vweird.f32 %v905_v7 }
  0xba   :  { %v306_v13 = vmul.f32 %v199_v8, %v869_v24  ;;  %v249_v14 = vmul.f32 %v646_v57, %v248_v6  ;;  %v203_v15 = vsub.f32 1.0, %v202_v9  ;;  %657 = vpow2.f32 %v590_v3  ;;  %vm922_vm12 = vmor %vm206_vm7, %vm207_vm8 }
  0xbb   :  { %v914_v18 = vadd.f32 %v866_v20, %v151_v12  ;;  %v213_v24 = vor.u32 1.1754944e-38, %v212_v11  ;;  %v225_v43 = vand.u32 2147483647, %v905_v7  ;;  %vm266_vm1 = vweird.f32 %v898_v60 }
  0xbc   :  { %v250_v16 = vadd.f32 %v646_v57, %v249_v14  ;;  %595 = vmatmul.msk.f32.vlgmr.msra.gmra.mxu1 %vm88_vm0, %v306_v13  ;;  %v204_v22 = vmul.f32 %v650_v4, %v203_v15  ;;  %v273_v51 = vor.u32 1.1754944e-38, %v272_v34  ;;  %vm271_vm3 = vcmp.eq.f32.partialorder %v270_v28, 8.507059e+37 }
  0xbd   :  { %v652_v19 = vpop.eup %651  ;;  %v594_v30 = vmul.f32 -1.442695, %v914_v18  ;;  %vm226_vm5 = vcmp.eq.f32.partialorder %v225_v43, 8.507059e+37 }
  0xbe   :  { %v654_v25 = vpop.eup %653  ;;  %v254_v26 = vsel %vm253_vm10, %v646_v57, %v250_v16  ;;  %v262_v20 = vmul.f32 %v652_v19, %v898_v60  ;;  %v205_v33 = vadd.f32 %v650_v4, %v204_v22  ;;  %vm267_vm14 = vweird.f32 %v652_v19 }
  0xbf   :  { %v259_v31 = vsel %vm909_vm9, %v258_v21, %v254_v26  ;;  %v932_v35 = vadd.f32 1.0, %v654_v25  ;;  %v656_v36 = vpop.eup %655  ;;  %659 = vpow2.f32 %v594_v30  ;;  %vm268_vm2 = vmor %vm266_vm1, %vm267_vm14 }
  0xc0   :  { %v310_v38 = vmul.f32 %v259_v31, %v873_v29  ;;  %v263_v39 = vsub.f32 1.0, %v262_v20  ;;  %v209_v40 = vsel %vm922_vm12, %v650_v4, %v205_v33  ;;  %v217_v42 = vmul.f32 %v656_v36, %v905_v7  ;;  %v658_v44 = vpop.eup %657  ;;  %v968_v33 = vld [vmem:[%s1044_s4] ss:$0 sm:$0xff]  ;;  %s806_s4 = smov [#allocation8]  }
  0xc1   :  { %661 = vrcp.f32 %v932_v35  ;;  %v214_v45 = vsel %vm917_vm11, %v213_v24, %v209_v40  ;;  %v227_v29 = vand.u32 2147483648, %v905_v7  ;;  %vm222_vm15 = vweird.f32 %v656_v36  ;;  %s563_s10 = sshll.u32 %s806_s4, 4  ;;  %s564_s10 = int_to_ptr.vmem [resolvable:$true] %s563_s10 }
  0xc2   :  { %v264_v46 = vmul.f32 %v652_v19, %v263_v39  ;;  %599 = vmatmul.msk.f32.vlgmr.msra.gmra.mxu3 %vm88_vm0, %v310_v38  ;;  %v307_v47 = vmul.f32 %v214_v45, %v877_v32  ;;  %v218_v48 = vsub.f32 1.0, %v217_v42  ;;  %v181_v49 = vadd.f32 1.0, %v658_v44  ;;  %vm223_vm4 = vmor %vm221_vm13, %vm222_vm15 }
  0xc3   :  { %v228_v57 = vor.u32 1.1754944e-38, %v227_v29  ;;  %v287_v4 = vand.u32 2147483648, %v932_v35  ;;  %v285_v6 = vand.u32 2147483647, %v932_v35  ;;  %vm281_vm7 = vweird.f32 %v932_v35 }
  0xc4   :  { %v265_v50 = vadd.f32 %v652_v19, %v264_v46  ;;  %v219_v53 = vmul.f32 %v656_v36, %v218_v48  ;;  %663 = vrcp.f32 %v181_v49  ;;  %596 = vmatmul.msk.f32.gmra.mxu1 %vm88_vm0, %v307_v47  ;;  %vm236_vm8 = vweird.f32 %v181_v49 }
  0xc5   :  { %v660_v54 = vpop.eup %659  ;;  %v240_v10 = vand.u32 2147483647, %v181_v49  ;;  %vm286_vm11 = vcmp.eq.f32.partialorder %v285_v6, 8.507059e+37 }
  0xc6   :  { %v269_v55 = vsel %vm268_vm2, %v652_v19, %v265_v50  ;;  %v220_v59 = vadd.f32 %v656_v36, %v219_v53  ;;  %v185_v61 = vadd.f32 1.0, %v660_v54 }
  0xc7   :  { %v662_v32 = vpop.eup %661  ;;  %v274_v58 = vsel %vm271_vm3, %v273_v51, %v269_v55  ;;  %vm241_vm13 = vcmp.eq.f32.partialorder %v240_v10, 8.507059e+37 }
  0xc8   :  { %v311_v60 = vmul.f32 %v274_v58, %v881_v37  ;;  %v277_v62 = vmul.f32 %v662_v32, %v932_v35  ;;  %v224_v63 = vsel %vm223_vm4, %v656_v36, %v220_v59  ;;  %665 = vrcp.f32 %v185_v61 }
  0xc9   :  { %v229_v0 = vsel %vm226_vm5, %v228_v57, %v224_v63  ;;  %vm282_vm6 = vweird.f32 %v662_v32  ;;  %v242_v37 = vand.u32 2147483648, %v181_v49  ;;  %v302_v22 = vand.u32 2147483648, %v185_v61 }
  0xca   :  { %v278_v1 = vsub.f32 1.0, %v277_v62  ;;  %600 = vmatmul.msk.f32.gmra.mxu3 %vm88_vm0, %v311_v60  ;;  %v664_v2 = vpop.eup %663  ;;  %v308_v3 = vmul.f32 %v229_v0, %v885_v41  ;;  %vm283_vm10 = vmor %vm281_vm7, %vm282_vm6  ;;  %v288_v41 = vor.u32 1.1754944e-38, %v287_v4  ;;  %v300_v25 = vand.u32 2147483647, %v185_v61 }
  0xcb   :  { %v232_v7 = vmul.f32 %v664_v2, %v181_v49  ;;  %vm237_vm9 = vweird.f32 %v664_v2  ;;  %v243_v16 = vor.u32 1.1754944e-38, %v242_v37  ;;  %vm296_vm15 = vweird.f32 %v185_v61 }
  0xcc   :  { %v279_v5 = vmul.f32 %v662_v32, %v278_v1  ;;  %597 = vmatmul.msk.f32.gmra.mxu1 %vm88_vm0, %v308_v3  ;;  %vm238_vm12 = vmor %vm236_vm8, %vm237_vm9  ;;  %v303_v28 = vor.u32 1.1754944e-38, %v302_v22  ;;  %vm301_vm2 = vcmp.eq.f32.partialorder %v300_v25, 8.507059e+37 }
  0xcd   :  { %v233_v9 = vsub.f32 1.0, %v232_v7 }
  0xce   :  { %v280_v8 = vadd.f32 %v662_v32, %v279_v5  ;;  %v666_v11 = vpop.eup %665 }
  0xcf   :  { %v234_v13 = vmul.f32 %v664_v2, %v233_v9  ;;  %v292_v14 = vmul.f32 %v666_v11, %v185_v61  ;;  %vm297_vm14 = vweird.f32 %v666_v11 }
  0xd0   :  { %v284_v12 = vsel %vm283_vm10, %v662_v32, %v280_v8  ;;  %vm298_vm1 = vmor %vm296_vm15, %vm297_vm14 }
  0xd1   :  { %v289_v15 = vsel %vm286_vm11, %v288_v41, %v284_v12  ;;  %v235_v19 = vadd.f32 %v664_v2, %v234_v13  ;;  %v293_v21 = vsub.f32 1.0, %v292_v14 }
  0xd2   :  { %v312_v17 = vmul.f32 %v289_v15, %v889_v52 }
  0xd3   :  { %v239_v23 = vsel %vm238_vm12, %v664_v2, %v235_v19  ;;  %v294_v24 = vmul.f32 %v666_v11, %v293_v21 }
  0xd4   :  { %601 = vmatmul.msk.f32.gmra.mxu3 %vm88_vm0, %v312_v17  ;;  %v244_v26 = vsel %vm241_vm13, %v243_v16, %v239_v23 }
  0xd5   :  { %v309_v27 = vmul.f32 %v244_v26, %v892_v56  ;;  %v295_v20 = vadd.f32 %v666_v11, %v294_v24 }
  0xd7   :  { %v299_v30 = vsel %vm298_vm1, %v666_v11, %v295_v20  ;;  %598 = vmatmul.msk.f32.gmra.mxu1 %vm88_vm0, %v309_v27 }
  0xd8   :  { %v304_v52 = vsel %vm301_vm2, %v303_v28, %v299_v30 }
  0xd9   :  { %v313_v31 = vmul.f32 %v304_v52, %v914_v18 }
  0xdc   :  { %602 = vmatmul.msk.f32.gmra.mxu3 %vm88_vm0, %v313_v31 }
 0x139   :  { %v367_v34 = vpop.f32.mrf.mxu1 }
 0x13a   :  { %v368_v56 = vadd.f32 %v968_v33, %v367_v34 }
 0x13c   :  { %v603_v35 = vmul.f32 -1.442695, %v368_v56 }
 0x13e   :  { %667 = vpow2.f32 %v603_v35 }
 0x141   :  { %v370_v36 = vpop.f32.mrf.mxu1 }
 0x142   :  { %v972_v38 = vadd.f32 %v968_v33, %v370_v36 }
 0x144   :  { %v668_v39 = vpop.eup %667  ;;  %v604_v18 = vmul.f32 -1.442695, %v972_v38 }
 0x145   :  { %v415_v40 = vadd.f32 1.0, %v668_v39  ;;  %v379_v42 = vpop.f32.mrf.mxu3 }
 0x146   :  { %v976_v43 = vadd.f32 %v968_v33, %v379_v42 }
 0x147   :  { %669 = vrcp.f32 %v415_v40  ;;  %v432_v32 = vand.u32 2147483647, %v415_v40  ;;  %v434_v58 = vand.u32 2147483648, %v415_v40  ;;  %vm428_vm4 = vweird.f32 %v415_v40 }
 0x148   :  { %671 = vpow2.f32 %v604_v18  ;;  %v607_v44 = vmul.f32 -1.442695, %v976_v43 }
 0x149   :  { %v373_v45 = vpop.f32.mrf.mxu1  ;;  %v435_v63 = vor.u32 1.1754944e-38, %v434_v58  ;;  %vm433_vm6 = vcmp.eq.f32.partialorder %v432_v32, 8.507059e+37 }
 0x14a   :  { %673 = vpow2.f32 %v607_v44  ;;  %v980_v46 = vadd.f32 %v968_v33, %v373_v45 }
 0x14c   :  { %v605_v47 = vmul.f32 -1.442695, %v980_v46 }
 0x14d   :  { %v670_v29 = vpop.eup %669  ;;  %v382_v48 = vpop.f32.mrf.mxu3 }
 0x14e   :  { %v672_v49 = vpop.eup %671  ;;  %v424_v50 = vmul.f32 %v670_v29, %v415_v40  ;;  %v984_v51 = vadd.f32 %v968_v33, %v382_v48  ;;  %675 = vpow2.f32 %v605_v47  ;;  %vm429_vm3 = vweird.f32 %v670_v29 }
 0x14f   :  { %v416_v53 = vadd.f32 1.0, %v672_v49  ;;  %vm430_vm5 = vmor %vm428_vm4, %vm429_vm3 }
 0x150   :  { %v674_v54 = vpop.eup %673  ;;  %v425_v55 = vsub.f32 1.0, %v424_v50  ;;  %v608_v57 = vmul.f32 -1.442695, %v984_v51 }
 0x151   :  { %677 = vrcp.f32 %v416_v53  ;;  %v419_v61 = vadd.f32 1.0, %v674_v54  ;;  %v447_v9 = vand.u32 2147483647, %v416_v53  ;;  %v449_v12 = vand.u32 2147483648, %v416_v53 }
 0x152   :  { %v426_v59 = vmul.f32 %v670_v29, %v425_v55  ;;  %679 = vpow2.f32 %v608_v57  ;;  %vm443_vm8 = vweird.f32 %v416_v53 }
 0x153   :  { %681 = vrcp.f32 %v419_v61  ;;  %v492_v17 = vand.u32 2147483647, %v419_v61  ;;  %vm448_vm9 = vcmp.eq.f32.partialorder %v447_v9, 8.507059e+37  ;;  %v450_v24 = vor.u32 1.1754944e-38, %v449_v12 }
 0x154   :  { %v427_v60 = vadd.f32 %v670_v29, %v426_v59  ;;  %v676_v62 = vpop.eup %675  ;;  %v376_v0 = vpop.f32.mrf.mxu1  ;;  %v494_v25 = vand.u32 2147483648, %v419_v61  ;;  %vm488_vm11 = vweird.f32 %v419_v61 }
 0x155   :  { %v987_v2 = vadd.f32 1.0, %v676_v62  ;;  %v990_v3 = vadd.f32 %v968_v33, %v376_v0  ;;  %vm1003_vm13 = vcmp.eq.f32.partialorder %v492_v17, 8.507059e+37 }
 0x156   :  { %v431_v1 = vsel %vm430_vm5, %v670_v29, %v427_v60  ;;  %v495_v40 = vor.u32 1.1754944e-38, %v494_v25 }
 0x157   :  { %v678_v4 = vpop.eup %677  ;;  %v436_v5 = vsel %vm433_vm6, %v435_v63, %v431_v1  ;;  %v385_v6 = vpop.f32.mrf.mxu3  ;;  %683 = vrcp.f32 %v987_v2  ;;  %v606_v13 = vmul.f32 -1.442695, %v990_v3  ;;  %v462_v35 = vand.u32 2147483647, %v987_v2 }
 0x158   :  { %v680_v7 = vpop.eup %679  ;;  %v543_v37 = vmul.f32 %v436_v5, %v368_v56  ;;  %v439_v8 = vmul.f32 %v678_v4, %v416_v53  ;;  %v998_v14 = vadd.f32 %v968_v33, %v385_v6  ;;  %vm444_vm7 = vweird.f32 %v678_v4 }
 0x159   :  { %v993_v10 = vadd.f32 1.0, %v680_v7  ;;  %v682_v11 = vpop.eup %681  ;;  %vm445_vm10 = vmor %vm443_vm8, %vm444_vm7  ;;  %v464_v18 = vand.u32 2147483648, %v987_v2  ;;  %vm458_vm1 = vweird.f32 %v987_v2  ;;  %vm463_vm2 = vcmp.eq.f32.partialorder %v462_v35, 8.507059e+37 }
 0x15a   :  { %551 = vst.msk [vmem:[#allocation8] sm:$0xff] %vm88_vm0, %v543_v37  ;;  %v440_v41 = vsub.f32 1.0, %v439_v8  ;;  %v484_v15 = vmul.f32 %v682_v11, %v419_v61  ;;  %v609_v21 = vmul.f32 -1.442695, %v998_v14  ;;  %vm489_vm12 = vweird.f32 %v682_v11 }
 0x15b   :  { %685 = vrcp.f32 %v993_v10  ;;  %vm490_vm14 = vmor %vm488_vm11, %vm489_vm12  ;;  %v465_v54 = vor.u32 1.1754944e-38, %v464_v18  ;;  %v507_v55 = vand.u32 2147483647, %v993_v10  ;;  %v509_v57 = vand.u32 2147483648, %v993_v10 }
 0x15c   :  { %v441_v16 = vmul.f32 %v678_v4, %v440_v41  ;;  %v485_v19 = vsub.f32 1.0, %v484_v15  ;;  %687 = vpow2.f32 %v606_v13  ;;  %vm503_vm5 = vweird.f32 %v993_v10 }
 0x15d   :  { %v684_v22 = vpop.eup %683  ;;  %689 = vpow2.f32 %v609_v21  ;;  %v510_v63 = vor.u32 1.1754944e-38, %v509_v57  ;;  %vm508_vm7 = vcmp.eq.f32.partialorder %v507_v55, 8.507059e+37 }
 0x15e   :  { %v442_v23 = vadd.f32 %v678_v4, %v441_v16  ;;  %v486_v26 = vmul.f32 %v682_v11, %v485_v19  ;;  %v454_v27 = vmul.f32 %v684_v22, %v987_v2  ;;  %vm459_vm15 = vweird.f32 %v684_v22 }
 0x15f   :  { %v388_v20 = vpop.f32.mrf.mxu3  ;;  %vm460_vm3 = vmor %vm458_vm1, %vm459_vm15 }
 0x160   :  { %v446_v28 = vsel %vm445_vm10, %v678_v4, %v442_v23  ;;  %v1008_v52 = vadd.f32 %v968_v33, %v388_v20  ;;  %v487_v34 = vadd.f32 %v682_v11, %v486_v26  ;;  %v455_v56 = vsub.f32 1.0, %v454_v27 }
 0x161   :  { %v451_v31 = vsel %vm448_vm9, %v450_v24, %v446_v28  ;;  %v686_v36 = vpop.eup %685 }
 0x162   :  { %v544_v39 = vmul.f32 %v451_v31, %v972_v38  ;;  %v610_v42 = vmul.f32 -1.442695, %v1008_v52  ;;  %v688_v44 = vpop.eup %687  ;;  %v491_v45 = vsel %vm490_vm14, %v682_v11, %v487_v34  ;;  %v456_v29 = vmul.f32 %v684_v22, %v455_v56 }
 0x163   :  { %v499_v33 = vmul.f32 %v686_v36, %v993_v10  ;;  %v496_v47 = vsel %vm1003_vm13, %v495_v40, %v491_v45  ;;  %v418_v38 = vadd.f32 1.0, %v688_v44  ;;  %v690_v53 = vpop.eup %689  ;;  %vm504_vm4 = vweird.f32 %v686_v36 }
 0x164   :  { %552 = vst.msk [vmem:[#allocation8 + $0x8] sm:$0xff] %vm88_vm0, %v544_v39  ;;  %691 = vpow2.f32 %v610_v42  ;;  %v547_v48 = vmul.f32 %v496_v47, %v976_v43  ;;  %v457_v49 = vadd.f32 %v684_v22, %v456_v29  ;;  %v421_v59 = vadd.f32 1.0, %v690_v53  ;;  %vm505_vm6 = vmor %vm503_vm5, %vm504_vm4 }
 0x165   :  { %v500_v50 = vsub.f32 1.0, %v499_v33  ;;  %693 = vrcp.f32 %v418_v38  ;;  %v479_v37 = vand.u32 2147483648, %v418_v38  ;;  %v477_v10 = vand.u32 2147483647, %v418_v38 }
 0x166   :  { %555 = vst.msk [vmem:[#allocation8 + $0x20] sm:$0xff] %vm88_vm0, %v547_v48  ;;  %v461_v32 = vsel %vm460_vm3, %v684_v22, %v457_v49  ;;  %695 = vrcp.f32 %v421_v59  ;;  %vm473_vm9 = vweird.f32 %v418_v38  ;;  %v522_v13 = vand.u32 2147483647, %v421_v59 }
 0x167   :  { %v501_v58 = vmul.f32 %v686_v36, %v500_v50  ;;  %v466_v61 = vsel %vm463_vm2, %v465_v54, %v461_v32  ;;  %v524_v15 = vand.u32 2147483648, %v421_v59  ;;  %v480_v16 = vor.u32 1.1754944e-38, %v479_v37 }
 0x168   :  { %v545_v43 = vmul.f32 %v466_v61, %v980_v46  ;;  %vm478_vm12 = vcmp.eq.f32.partialorder %v477_v10, 8.507059e+37  ;;  %vm518_vm13 = vweird.f32 %v421_v59  ;;  %vm523_vm15 = vcmp.eq.f32.partialorder %v522_v13, 8.507059e+37 }
 0x169   :  { %v502_v60 = vadd.f32 %v686_v36, %v501_v58  ;;  %v525_v25 = vor.u32 1.1754944e-38, %v524_v15 }
 0x16a   :  { %v692_v62 = vpop.eup %691  ;;  %553 = vst.msk [vmem:[#allocation8 + $0x10] sm:$0xff] %vm88_vm0, %v545_v43 }
 0x16b   :  { %v506_v0 = vsel %vm505_vm6, %v686_v36, %v502_v60  ;;  %v422_v1 = vadd.f32 1.0, %v692_v62  ;;  %v694_v2 = vpop.eup %693 }
 0x16c   :  { %v511_v4 = vsel %vm508_vm7, %v510_v63, %v506_v0  ;;  %v469_v6 = vmul.f32 %v694_v2, %v418_v38  ;;  %v696_v7 = vpop.eup %695  ;;  %vm474_vm8 = vweird.f32 %v694_v2 }
 0x16d   :  { %v548_v5 = vmul.f32 %v511_v4, %v984_v51  ;;  %697 = vrcp.f32 %v422_v1  ;;  %v514_v8 = vmul.f32 %v696_v7, %v421_v59  ;;  %vm475_vm10 = vmor %vm473_vm9, %vm474_vm8  ;;  %vm519_vm11 = vweird.f32 %v696_v7 }
 0x16e   :  { %v470_v46 = vsub.f32 1.0, %v469_v6  ;;  %vm520_vm14 = vmor %vm518_vm13, %vm519_vm11  ;;  %v539_v26 = vand.u32 2147483648, %v422_v1  ;;  %v537_v28 = vand.u32 2147483647, %v422_v1  ;;  %vm533_vm2 = vweird.f32 %v422_v1 }
 0x16f   :  { %556 = vst.msk [vmem:[#allocation8 + $0x28] sm:$0xff] %vm88_vm0, %v548_v5  ;;  %v515_v11 = vsub.f32 1.0, %v514_v8 }
 0x170   :  { %v471_v9 = vmul.f32 %v694_v2, %v470_v46  ;;  %v540_v56 = vor.u32 1.1754944e-38, %v539_v26  ;;  %vm538_vm4 = vcmp.eq.f32.partialorder %v537_v28, 8.507059e+37 }
 0x171   :  { %v516_v51 = vmul.f32 %v696_v7, %v515_v11 }
 0x172   :  { %v472_v12 = vadd.f32 %v694_v2, %v471_v9 }
 0x173   :  { %v698_v41 = vpop.eup %697  ;;  %v517_v22 = vadd.f32 %v696_v7, %v516_v51 }
 0x174   :  { %v529_v17 = vmul.f32 %v698_v41, %v422_v1  ;;  %v476_v19 = vsel %vm475_vm10, %v694_v2, %v472_v12  ;;  %vm534_vm1 = vweird.f32 %v698_v41 }
 0x175   :  { %v481_v21 = vsel %vm478_vm12, %v480_v16, %v476_v19  ;;  %v521_v27 = vsel %vm520_vm14, %v696_v7, %v517_v22  ;;  %vm535_vm3 = vmor %vm533_vm2, %vm534_vm1 }
 0x176   :  { %v530_v23 = vsub.f32 1.0, %v529_v17  ;;  %v546_v24 = vmul.f32 %v481_v21, %v990_v3  ;;  %v526_v30 = vsel %vm523_vm15, %v525_v25, %v521_v27 }
 0x177   :  { %v549_v31 = vmul.f32 %v526_v30, %v998_v14 }
 0x178   :  { %v531_v20 = vmul.f32 %v698_v41, %v530_v23  ;;  %554 = vst.msk [vmem:[#allocation8 + $0x18] sm:$0xff] %vm88_vm0, %v546_v24 }
 0x179   :  { %557 = vst.msk [vmem:[#allocation8 + $0x30] sm:$0xff] %vm88_vm0, %v549_v31 }
 0x17a   :  { %v532_v34 = vadd.f32 %v698_v41, %v531_v20 }
 0x17c   :  { %v536_v3 = vsel %vm535_vm3, %v698_v41, %v532_v34 }
 0x17d   :  { %v541_v35 = vsel %vm538_vm4, %v540_v56, %v536_v3 }
 0x17e   :  { %v550_v36 = vmul.f32 %v541_v35, %v1008_v52 }
 0x180   :  { %558 = vst.msk [vmem:[#allocation8 + $0x38] sm:$0xff] %vm88_vm0, %v550_v36 }
 0x181   :  { %571 = dma.vmem_to_hbm [thread:$0]  %s564_s10, 1024, %s566_s13, [#allocation4], %s802_s26, %s802_s26, %s803_s27  }
 0x182   :  { %799 = dma.done.wait [#allocation4], 1024  }
 0x183   :  { %800 = vsyncadd [#allocation4], 4294966272 }
 0x184   :  { %576 = vsyncpa [#allocation3], 1 }
 0x185   :  { %577 = vsyncpa [#allocation6], 1 }
 0x186   :  { %578 = vsyncpa [#allocation4], 1 }

</bundles_post_ra>
